<compile_context>
chip_gen: v5e
topology: v5e:2x2
jax: 0.10.0
libtpu: 0.0.40
codegen_flags: <defaults>
</compile_context>

<pallas_src>
import jax
import jax.numpy as jnp
from jax.experimental import pallas as pl
from jax.experimental.pallas import tpu as pltpu

# ---- problem sizes (small, consistent with the module's __init__) ----------
STATE_DIM = 8                    # per-actor state dimension
ACTOR_NUM = 2                    # as in the reference script
ACTION_DIM = 4
IN_DIM = STATE_DIM * ACTOR_NUM   # 16
H1, H2, H3 = 128, 64, 16
BATCH = 2

PAD = 128                        # hidden activations stay 128-lane dense
MAX_TILE_B = 4096                # largest batch tile per grid step
MIN_SPLIT_ROWS = 64              # try to give each TC at least this many rows


def _round_up(n, m):
    return ((n + m - 1) // m) * m


def _choose_tiling(batch):
    """Pick (padded_batch, tile_b, n_steps) as a near-equal, 8-aligned split."""
    b8 = _round_up(max(batch, 8), 8)
    n_steps = pl.cdiv(b8, MAX_TILE_B)
    if b8 >= 2 * MIN_SPLIT_ROWS:
        # >=2 grid steps so the "parallel" axis can use both v7x TensorCores.
        n_steps = max(n_steps, 2)
    tile_b = _round_up(pl.cdiv(b8, n_steps), 8)
    return tile_b * n_steps, tile_b, n_steps


def actor_kernel(x_ref, w1_ref, w23_ref, w4_ref, b123_ref, bm4_ref, out_ref):
    """Fused 4-layer MLP.

    x_ref    : [tile_b, 16]  bf16   (natural input width, no lane padding)
    w1_ref   : [16, 128]     bf16
    w23_ref  : [2, 128, 128] bf16   (layers 2 & 3, zero-padded, [in, out])
    w4_ref   : [128, 4]      bf16   (rows >= 16 are zero)
    b123_ref : [3, 128]      f32    (biases of layers 1-3, zero-padded)
    bm4_ref  : [2, 4]        f32    (row 0 = bias 4, row 1 = max_action)
    out_ref  : [tile_b, 4]   f32
    """
    x = x_ref[...]                                                   # bf16

    h = jnp.dot(x, w1_ref[...], preferred_element_type=jnp.float32)
    h = jnp.maximum(h + b123_ref[0:1, :], 0.0)

    h = jnp.dot(h.astype(jnp.bfloat16), w23_ref[0],
                preferred_element_type=jnp.float32)
    h = jnp.maximum(h + b123_ref[1:2, :], 0.0)

    h = jnp.dot(h.astype(jnp.bfloat16), w23_ref[1],
                preferred_element_type=jnp.float32)
    h = jnp.maximum(h + b123_ref[2:3, :], 0.0)

    logits = jnp.dot(h.astype(jnp.bfloat16), w4_ref[...],
                     preferred_element_type=jnp.float32)
    out_ref[...] = bm4_ref[1:2, :] * jnp.tanh(logits + bm4_ref[0:1, :])


def pack_params(params, max_action):
    """Pack the 8 weight/bias tensors + max_action into 5 device buffers."""
    w1, b1, w2, b2, w3, b3, w4, b4 = params

    W1 = w1.astype(jnp.bfloat16)                                   # [16, 128]

    W23 = jnp.zeros((2, PAD, PAD), jnp.bfloat16)
    W23 = W23.at[0, :H1, :H2].set(w2.astype(jnp.bfloat16))
    W23 = W23.at[1, :H2, :H3].set(w3.astype(jnp.bfloat16))

    W4 = jnp.zeros((PAD, ACTION_DIM), jnp.bfloat16)
    W4 = W4.at[:H3, :].set(w4.astype(jnp.bfloat16))

    B123 = jnp.zeros((3, PAD), jnp.float32)
    B123 = B123.at[0, :H1].set(b1.reshape(-1))
    B123 = B123.at[1, :H2].set(b2.reshape(-1))
    B123 = B123.at[2, :H3].set(b3.reshape(-1))

    BM4 = jnp.stack([b4.reshape(-1), max_action.reshape(-1)]
                    ).astype(jnp.float32)                          # [2, 4]
    return W1, W23, W4, B123, BM4


@jax.jit
def actor_forward(x, w1, w23, w4, b123, bm4):
    """x: [B, IN_DIM] f32 -> [B, ACTION_DIM] f32."""
    B = x.shape[0]
    Bp, tile_b, n_steps = _choose_tiling(B)

    x_b = x.astype(jnp.bfloat16)              # bf16 input DMA (2 B/elem)
    if Bp != B:
        x_b = jnp.pad(x_b, ((0, Bp - B), (0, 0)))

    out = pl.pallas_call(
        actor_kernel,
        out_shape=jax.ShapeDtypeStruct((Bp, ACTION_DIM), jnp.float32),
        grid=(n_steps,),
        in_specs=[
            pl.BlockSpec((tile_b, IN_DIM), lambda i: (i, 0)),
            pl.BlockSpec((IN_DIM, PAD), lambda i: (0, 0)),
            pl.BlockSpec((2, PAD, PAD), lambda i: (0, 0, 0)),
            pl.BlockSpec((PAD, ACTION_DIM), lambda i: (0, 0)),
            pl.BlockSpec((3, PAD), lambda i: (0, 0)),
            pl.BlockSpec((2, ACTION_DIM), lambda i: (0, 0)),
        ],
        out_specs=pl.BlockSpec((tile_b, ACTION_DIM), lambda i: (i, 0)),
        compiler_params=pltpu.CompilerParams(
            dimension_semantics=("parallel",)),
    )(x_b, w1, w23, w4, b123, bm4)

    return out if Bp == B else out[:B]


def init_linear(key, fan_in, fan_out):
    """PyTorch-nn.Linear-like init; weight returned as [in, out] for x @ W."""
    kw, kb = jax.random.split(key)
    bound = 1.0 / jnp.sqrt(jnp.float32(fan_in))
    w = jax.random.uniform(kw, (fan_in, fan_out), jnp.float32, -bound, bound)
    b = jax.random.uniform(kb, (1, fan_out), jnp.float32, -bound, bound)
    return w, b


if __name__ == "__main__":
    root = jax.random.PRNGKey(0)
    k_x, k_x2, k1, k2, k3, k4, k_ma = jax.random.split(root, 7)

    w1, b1 = init_linear(k1, IN_DIM, H1)
    w2, b2 = init_linear(k2, H1, H2)
    w3, b3 = init_linear(k3, H2, H3)
    w4, b4 = init_linear(k4, H3, ACTION_DIM)
    params = (w1, b1, w2, b2, w3, b3, w4, b4)

    # max_action ~ upper bounds of a synthetic action space, shape [1, action_dim]
    max_action = jax.random.uniform(k_ma, (1, ACTION_DIM), jnp.float32, 0.5, 2.0)

    packed = pack_params(params, max_action)   # 5 small resident buffers

    # reference with matching bf16 matmul operands / f32 accumulation
    def ref(xi):
        def mm(a, w):
            return jnp.dot(a.astype(jnp.bfloat16), w.astype(jnp.bfloat16),
                           preferred_element_type=jnp.float32)
        h = jax.nn.relu(mm(xi, w1) + b1)
        h = jax.nn.relu(mm(h, w2) + b2)
        h = jax.nn.relu(mm(h, w3) + b3)
        return max_action * jnp.tanh(mm(h, w4) + b4)

    # small batch (module-sized): batch of concatenated actor states [B, 16]
    x = jax.random.normal(k_x, (BATCH, IN_DIM), jnp.float32)
    out = jax.block_until_ready(actor_forward(x, *packed))
    assert out.shape == (BATCH, ACTION_DIM)
    assert jnp.allclose(out, ref(x), atol=1e-2, rtol=1e-2)

    # larger batch: exercises the multi-step ("parallel") grid and the
    # near-equal remainder handling (B=200 -> 2 steps of 104 rows, 8 pad rows)
    x2 = jax.random.normal(k_x2, (200, IN_DIM), jnp.float32)
    out2 = jax.block_until_ready(actor_forward(x2, *packed))
    assert out2.shape == (200, ACTION_DIM)
    assert jnp.allclose(out2, ref(x2), atol=1e-2, rtol=1e-2)

    print("KERNEL_OK")
</pallas_src>

<mosaic_0001>
module attributes {stable_mosaic.version = 11 : i64} {
  func.func @actor_kernel(%arg0: i32, %arg1: memref<8x16xbf16, #tpu.memory_space<vmem>>, %arg2: memref<16x128xbf16, #tpu.memory_space<vmem>>, %arg3: memref<2x128x128xbf16, #tpu.memory_space<vmem>>, %arg4: memref<128x4xbf16, #tpu.memory_space<vmem>>, %arg5: memref<3x128xf32, #tpu.memory_space<vmem>>, %arg6: memref<2x4xf32, #tpu.memory_space<vmem>>, %arg7: memref<8x4xf32, #tpu.memory_space<vmem>>) attributes {dimension_semantics = [#tpu.dimension_semantics<parallel>], iteration_bounds = array<i64: 1>, scalar_prefetch = 0 : i64, scratch_operands = 0 : i64, tpu.core_type = #tpu.core_type<tc>, window_params = [{transform_indices = @transform_0, window_bounds = array<i64: 8, 16>}, {pipeline_mode = #tpu.pipeline_mode<synchronous>, transform_indices = @transform_1, window_bounds = array<i64: 16, 128>}, {pipeline_mode = #tpu.pipeline_mode<synchronous>, transform_indices = @transform_2, window_bounds = array<i64: 2, 128, 128>}, {pipeline_mode = #tpu.pipeline_mode<synchronous>, transform_indices = @transform_3, window_bounds = array<i64: 128, 4>}, {pipeline_mode = #tpu.pipeline_mode<synchronous>, transform_indices = @transform_4, window_bounds = array<i64: 3, 128>}, {pipeline_mode = #tpu.pipeline_mode<synchronous>, transform_indices = @transform_5, window_bounds = array<i64: 2, 4>}, {transform_indices = @transform_6, window_bounds = array<i64: 8, 4>}]} {
    %c0 = arith.constant 0 : index
    %c0_0 = arith.constant 0 : index
    %0 = vector.load %arg1[%c0, %c0_0] : memref<8x16xbf16, #tpu.memory_space<vmem>>, vector<8x16xbf16>
    %c0_1 = arith.constant 0 : index
    %c0_2 = arith.constant 0 : index
    %1 = vector.load %arg2[%c0_1, %c0_2] : memref<16x128xbf16, #tpu.memory_space<vmem>>, vector<16x128xbf16>
    %cst = arith.constant dense<0.000000e+00> : vector<8x128xf32>
    %2 = tpu.matmul %0, %1, %cst {dimension_numbers = #tpu.dot_dimension_numbers<[1], [0], [0], [1], [0, 0, 1, 1], [], []>} : vector<8x16xbf16>, vector<16x128xbf16>, vector<8x128xf32> -> vector<8x128xf32>
    %c0_3 = arith.constant 0 : index
    %c0_4 = arith.constant 0 : index
    %3 = vector.load %arg5[%c0_3, %c0_4] : memref<3x128xf32, #tpu.memory_space<vmem>>, vector<1x128xf32>
    %4 = vector.broadcast %3 : vector<1x128xf32> to vector<8x128xf32>
    %5 = arith.addf %2, %4 : vector<8x128xf32>
    %cst_5 = arith.constant 0.000000e+00 : f32
    %6 = vector.broadcast %cst_5 : f32 to vector<8x128xf32>
    %7 = arith.maximumf %5, %6 : vector<8x128xf32>
    %8 = arith.truncf %7 : vector<8x128xf32> to vector<8x128xbf16>
    %c0_6 = arith.constant 0 : index
    %c0_7 = arith.constant 0 : index
    %c0_8 = arith.constant 0 : index
    %9 = vector.load %arg3[%c0_6, %c0_7, %c0_8] : memref<2x128x128xbf16, #tpu.memory_space<vmem>>, vector<1x128x128xbf16>
    %10 = vector.shape_cast %9 : vector<1x128x128xbf16> to vector<128x128xbf16>
    %cst_9 = arith.constant dense<0.000000e+00> : vector<8x128xf32>
    %11 = tpu.matmul %8, %10, %cst_9 {dimension_numbers = #tpu.dot_dimension_numbers<[1], [0], [0], [1], [0, 0, 1, 1], [], []>} : vector<8x128xbf16>, vector<128x128xbf16>, vector<8x128xf32> -> vector<8x128xf32>
    %c1 = arith.constant 1 : index
    %c0_10 = arith.constant 0 : index
    %12 = vector.load %arg5[%c1, %c0_10] : memref<3x128xf32, #tpu.memory_space<vmem>>, vector<1x128xf32>
    %13 = vector.broadcast %12 : vector<1x128xf32> to vector<8x128xf32>
    %14 = arith.addf %11, %13 : vector<8x128xf32>
    %cst_11 = arith.constant 0.000000e+00 : f32
    %15 = vector.broadcast %cst_11 : f32 to vector<8x128xf32>
    %16 = arith.maximumf %14, %15 : vector<8x128xf32>
    %17 = arith.truncf %16 : vector<8x128xf32> to vector<8x128xbf16>
    %c1_12 = arith.constant 1 : index
    %c0_13 = arith.constant 0 : index
    %c0_14 = arith.constant 0 : index
    %18 = vector.load %arg3[%c1_12, %c0_13, %c0_14] : memref<2x128x128xbf16, #tpu.memory_space<vmem>>, vector<1x128x128xbf16>
    %19 = vector.shape_cast %18 : vector<1x128x128xbf16> to vector<128x128xbf16>
    %cst_15 = arith.constant dense<0.000000e+00> : vector<8x128xf32>
    %20 = tpu.matmul %17, %19, %cst_15 {dimension_numbers = #tpu.dot_dimension_numbers<[1], [0], [0], [1], [0, 0, 1, 1], [], []>} : vector<8x128xbf16>, vector<128x128xbf16>, vector<8x128xf32> -> vector<8x128xf32>
    %c2 = arith.constant 2 : index
    %c0_16 = arith.constant 0 : index
    %21 = vector.load %arg5[%c2, %c0_16] : memref<3x128xf32, #tpu.memory_space<vmem>>, vector<1x128xf32>
    %22 = vector.broadcast %21 : vector<1x128xf32> to vector<8x128xf32>
    %23 = arith.addf %20, %22 : vector<8x128xf32>
    %cst_17 = arith.constant 0.000000e+00 : f32
    %24 = vector.broadcast %cst_17 : f32 to vector<8x128xf32>
    %25 = arith.maximumf %23, %24 : vector<8x128xf32>
    %26 = arith.truncf %25 : vector<8x128xf32> to vector<8x128xbf16>
    %c0_18 = arith.constant 0 : index
    %c0_19 = arith.constant 0 : index
    %27 = vector.load %arg4[%c0_18, %c0_19] : memref<128x4xbf16, #tpu.memory_space<vmem>>, vector<128x4xbf16>
    %cst_20 = arith.constant dense<0.000000e+00> : vector<8x4xf32>
    %28 = tpu.matmul %26, %27, %cst_20 {dimension_numbers = #tpu.dot_dimension_numbers<[1], [0], [0], [1], [0, 0, 1, 1], [], []>} : vector<8x128xbf16>, vector<128x4xbf16>, vector<8x4xf32> -> vector<8x4xf32>
    %c1_21 = arith.constant 1 : index
    %c0_22 = arith.constant 0 : index
    %29 = vector.load %arg6[%c1_21, %c0_22] : memref<2x4xf32, #tpu.memory_space<vmem>>, vector<1x4xf32>
    %c0_23 = arith.constant 0 : index
    %c0_24 = arith.constant 0 : index
    %30 = vector.load %arg6[%c0_23, %c0_24] : memref<2x4xf32, #tpu.memory_space<vmem>>, vector<1x4xf32>
    %31 = vector.broadcast %30 : vector<1x4xf32> to vector<8x4xf32>
    %32 = arith.addf %28, %31 : vector<8x4xf32>
    %33 = math.tanh %32 : vector<8x4xf32>
    %34 = vector.broadcast %29 : vector<1x4xf32> to vector<8x4xf32>
    %35 = arith.mulf %34, %33 : vector<8x4xf32>
    %c0_25 = arith.constant 0 : index
    %c0_26 = arith.constant 0 : index
    %36 = vector.load %arg7[%c0_25, %c0_26] : memref<8x4xf32, #tpu.memory_space<vmem>>, vector<8x4xf32>
    tpu.vector_store %arg7[%c0_25, %c0_26], %35 {strides = array<i32>} : memref<8x4xf32, #tpu.memory_space<vmem>>, vector<8x4xf32>,
    return
  }
  func.func @transform_0(%arg0: i32) -> (i32, i32) {
    %c0_i32 = arith.constant 0 : i32
    %c0_i32_0 = arith.constant 0 : i32
    return %arg0, %c0_i32 : i32, i32
  }
  func.func @transform_1(%arg0: i32) -> (i32, i32) {
    %c0_i32 = arith.constant 0 : i32
    %c0_i32_0 = arith.constant 0 : i32
    %c0_i32_1 = arith.constant 0 : i32
    return %c0_i32, %c0_i32_0 : i32, i32
  }
  func.func @transform_2(%arg0: i32) -> (i32, i32, i32) {
    %c0_i32 = arith.constant 0 : i32
    %c0_i32_0 = arith.constant 0 : i32
    %c0_i32_1 = arith.constant 0 : i32
    %c0_i32_2 = arith.constant 0 : i32
    return %c0_i32, %c0_i32_0, %c0_i32_1 : i32, i32, i32
  }
  func.func @transform_3(%arg0: i32) -> (i32, i32) {
    %c0_i32 = arith.constant 0 : i32
    %c0_i32_0 = arith.constant 0 : i32
    %c0_i32_1 = arith.constant 0 : i32
    return %c0_i32, %c0_i32_0 : i32, i32
  }
  func.func @transform_4(%arg0: i32) -> (i32, i32) {
    %c0_i32 = arith.constant 0 : i32
    %c0_i32_0 = arith.constant 0 : i32
    %c0_i32_1 = arith.constant 0 : i32
    return %c0_i32, %c0_i32_0 : i32, i32
  }
  func.func @transform_5(%arg0: i32) -> (i32, i32) {
    %c0_i32 = arith.constant 0 : i32
    %c0_i32_0 = arith.constant 0 : i32
    %c0_i32_1 = arith.constant 0 : i32
    return %c0_i32, %c0_i32_0 : i32, i32
  }
  func.func @transform_6(%arg0: i32) -> (i32, i32) {
    %c0_i32 = arith.constant 0 : i32
    %c0_i32_0 = arith.constant 0 : i32
    return %arg0, %c0_i32 : i32, i32
  }
}

</mosaic_0001>

<bundles_post_ra>
// kernel: actor_forward.1
= control target key start
LH: loop header
LB: loop body
LE: loop exit
PB: predicated region body
PF: predicated region fallthrough
CT: control target
= control target key end

     0   :  { %11 = vsyncpa [#allocation3], 0  ;;  %s485_s24 = smov [#allocation2]   ;;  %s486_s26 = smov 64   ;;  %s574_s0 = inlined_call_operand.vmem [shape: bf16[8,16], index: 0, kind: input, shape index: {}]   ;;  %s575_s1 = inlined_call_operand.vmem [shape: bf16[16,128], index: 1, kind: input, shape index: {}]   ;;  %s576_s2 = inlined_call_operand.hbm [shape: bf16[2,128,128], index: 2, kind: input, shape index: {}]   ;;  %s577_s3 = inlined_call_operand.vmem [shape: bf16[128,4], index: 3, kind: input, shape index: {}]   ;;  %s578_s4 = inlined_call_operand.vmem [shape: f32[3,128], index: 4, kind: input, shape index: {}]   ;;  %s579_s5 = inlined_call_operand.vmem [shape: f32[2,4], index: 5, kind: input, shape index: {}]   ;;  %s580_s6 = inlined_call_operand.vmem [shape: f32[8,4], index: 6, kind: output, shape index: {}]  }
   0x1   :  { %s20_s23 = sshll.u32 %s576_s2, 4  ;;  %s22_s25 = sshll.u32 %s485_s24, 4  ;;  %s21_s23 = int_to_ptr.hbm [resolvable:$true] %s20_s23  ;;  %s23_s25 = int_to_ptr.vmem [resolvable:$true] %s22_s25 }
   0x2   :  { %s487_s27 = smov 4  }
   0x3   :  { %28 = dma.hbm_to_vmem [thread:$0]  %s21_s23, 2048, %s23_s25, [#allocation3], %s486_s26, %s486_s26, %s487_s27  }
   0x4   :  { %483 = dma.done.wait [#allocation3], 2048  }
   0x5   :  { %484 = vsyncadd [#allocation3], 4294965248  ;;  %v424_v0 = vld [vmem:[%s575_s1] sm:$0xff]  ;;  %v432_v1 = vld [vmem:[#allocation2 + $0x38] sm:$0xff]  ;;  %vm51_vm0 = vcmask 130048   ;;  %vm316_vm1 = vcmask 31744  }
   0x6   :  { %62 = vmatpush.bf16.msra.mxu0 %v424_v0  ;;  %v40_v2 = vld [vmem:[%s574_s0] sm:$0xf]  ;;  %136 = vmatpush.bf16.msra.mxu1 %v432_v1  ;;  %v431_v3 = vld [vmem:[#allocation2 + $0x30] sm:$0xff]  ;;  %v430_v4 = vld [vmem:[#allocation2 + $0x28] sm:$0xff] }
   0x7   :  { %v429_v5 = vld [vmem:[#allocation2 + $0x20] sm:$0xff]  ;;  %v428_v6 = vld [vmem:[#allocation2 + $0x18] sm:$0xff]  ;;  %v427_v7 = vld [vmem:[#allocation2 + $0x10] sm:$0xff] }
   0x8   :  { %v426_v8 = vld [vmem:[#allocation2 + $0x8] sm:$0xff]  ;;  %v425_v9 = vld [vmem:[#allocation2] sm:$0xff]  ;;  %v440_v10 = vld [vmem:[#allocation2 + $0x78] sm:$0xff] }
   0x9   :  { %327 = vmatmul.msk.bf16.vlgmr.msra.gmra.mxu0 %vm51_vm0, %v40_v2  ;;  %218 = vmatpush.bf16.msra.mxu2 %v440_v10  ;;  %v439_v11 = vld [vmem:[#allocation2 + $0x70] sm:$0xff]  ;;  %v438_v12 = vld [vmem:[#allocation2 + $0x68] sm:$0xff]  ;;  %v437_v13 = vld [vmem:[#allocation2 + $0x60] sm:$0xff] }
   0xa   :  { %137 = vmatpush.bf16.msra.mxu1 %v431_v3  ;;  %v436_v14 = vld [vmem:[#allocation2 + $0x58] sm:$0xff]  ;;  %v435_v15 = vld [vmem:[#allocation2 + $0x50] sm:$0xff]  ;;  %v452_v16 = vld [vmem:[%s578_s4] ss:$0 sm:$0xff] }
   0xb   :  { %v434_v22 = vld [vmem:[#allocation2 + $0x48] sm:$0xff]  ;;  %v433_v23 = vld [vmem:[#allocation2 + $0x40] sm:$0xff]  ;;  %v448_v24 = vld [vmem:[%s577_s3 + $0x38] sm:$0xff] }
   0xc   :  { %300 = vmatpush.bf16.msra.mxu3 %v448_v24  ;;  %v447_v25 = vld [vmem:[%s577_s3 + $0x30] sm:$0xff]  ;;  %v446_v26 = vld [vmem:[%s577_s3 + $0x28] sm:$0xff]  ;;  %v445_v27 = vld [vmem:[%s577_s3 + $0x20] sm:$0xff] }
   0xd   :  { %219 = vmatpush.bf16.msra.mxu2 %v439_v11  ;;  %v444_v28 = vld [vmem:[%s577_s3 + $0x18] sm:$0xff]  ;;  %v443_v29 = vld [vmem:[%s577_s3 + $0x10] sm:$0xff]  ;;  %v453_v30 = vld [vmem:[%s578_s4 + $0x1] ss:$0 sm:$0xff] }
   0xe   :  { %138 = vmatpush.bf16.msra.mxu1 %v430_v4  ;;  %v442_v36 = vld [vmem:[%s577_s3 + $0x8] sm:$0xff]  ;;  %v441_v37 = vld [vmem:[%s577_s3] sm:$0xff] }
   0xf   :  { %v454_v38 = vld [vmem:[%s578_s4 + $0x2] ss:$0 sm:$0xff]  ;;  %v455_v44 = vld [vmem:[%s579_s5] ss:$0 sm:$0xff]  ;;  %v456_v47 = vld [vmem:[%s579_s5 + $0x1] ss:$0 sm:$0xff] }
  0x10   :  { %301 = vmatpush.bf16.msra.mxu3 %v447_v25 }
  0x11   :  { %220 = vmatpush.bf16.msra.mxu2 %v438_v12 }
  0x12   :  { %139 = vmatpush.bf16.msra.mxu1 %v429_v5 }
  0x14   :  { %302 = vmatpush.bf16.msra.mxu3 %v446_v26 }
  0x15   :  { %221 = vmatpush.bf16.msra.mxu2 %v437_v13 }
  0x16   :  { %140 = vmatpush.bf16.msra.mxu1 %v428_v6 }
  0x18   :  { %303 = vmatpush.bf16.msra.mxu3 %v445_v27 }
  0x19   :  { %222 = vmatpush.bf16.msra.mxu2 %v436_v14 }
  0x1a   :  { %141 = vmatpush.bf16.msra.mxu1 %v427_v7 }
  0x1c   :  { %304 = vmatpush.bf16.msra.mxu3 %v444_v28 }
  0x1d   :  { %223 = vmatpush.bf16.msra.mxu2 %v435_v15 }
  0x1e   :  { %142 = vmatpush.bf16.msra.mxu1 %v426_v8 }
  0x20   :  { %305 = vmatpush.bf16.msra.mxu3 %v443_v29 }
  0x21   :  { %224 = vmatpush.bf16.msra.mxu2 %v434_v22 }
  0x22   :  { %143 = vmatpush.bf16.msra.mxu1 %v425_v9 }
  0x24   :  { %306 = vmatpush.bf16.msra.mxu3 %v442_v36 }
  0x25   :  { %225 = vmatpush.bf16.msra.mxu2 %v433_v23 }
  0x28   :  { %307 = vmatpush.bf16.msra.mxu3 %v441_v37 }
  0x86   :  { %v64_v17 = vpop.f32.mrf.mxu0 }
  0x87   :  { %v65_v18 = vadd.f32 %v452_v16, %v64_v17 }
  0x89   :  { %v68_v19 = vmax.f32 %v65_v18, 0.0 }
  0x8b   :  { %v69_v20 = vpack.c.bf16 %v68_v19, %v68_v19 }
  0x8d   :  { %144 = vmatmul.bf16.vlgmr.msra.gmra.mxu1 %v69_v20 }
  0x8e   :  { %v66_v21 = vpop.f32.mrf.mxu0 }
 0x10a   :  { %v145_v31 = vpop.f32.mrf.mxu1 }
 0x10b   :  { %v146_v32 = vadd.f32 %v453_v30, %v145_v31 }
 0x10d   :  { %v149_v33 = vmax.f32 %v146_v32, 0.0 }
 0x10f   :  { %v150_v34 = vpack.c.bf16 %v149_v33, %v149_v33 }
 0x111   :  { %226 = vmatmul.bf16.vlgmr.msra.gmra.mxu2 %v150_v34 }
 0x112   :  { %v147_v35 = vpop.f32.mrf.mxu1 }
 0x194   :  { %v227_v39 = vpop.f32.mrf.mxu2 }
 0x195   :  { %v228_v40 = vadd.f32 %v454_v38, %v227_v39 }
 0x197   :  { %v231_v41 = vmax.f32 %v228_v40, 0.0 }
 0x199   :  { %v232_v42 = vpack.c.bf16 %v231_v41, %v231_v41 }
 0x19b   :  { %308 = vmatmul.bf16.vlgmr.msra.gmra.mxu3 %v232_v42 }
 0x19c   :  { %v229_v43 = vpop.f32.mrf.mxu2 }
 0x21e   :  { %v309_v45 = vpop.f32.mrf.mxu3 }
 0x21f   :  { %v310_v46 = vadd.f32 %v455_v44, %v309_v45 }
 0x221   :  { %457 = vtanh.f32 %v310_v46 }
 0x226   :  { %v311_v48 = vpop.f32.mrf.mxu3 }
 0x227   :  { %v458_v49 = vpop.eup %457 }
 0x228   :  { %v315_v50 = vmul.f32 %v458_v49, %v456_v47 }
 0x22a   :  { %317 = vst.msk [vmem:[%s580_s6] sm:$0xff] %vm316_vm1, %v315_v50 }
 0x22b   :  { %322 = vsyncpa [#allocation3], 1 }

</bundles_post_ra>
